<compile_context>
chip_gen: v6e
topology: v6e:2x2x1
jax: 0.10.0
libtpu: 0.0.40
codegen_flags: <defaults>
</compile_context>

<pallas_src>
import jax
import jax.numpy as jnp
import numpy as np
from jax.experimental import pallas as pl
from jax.experimental.pallas import tpu as pltpu

_VMEM_LIMIT = 32 * 1024 * 1024   # explicit scoped-VMEM cap; safe on v5e/v6e/v7x
_VMEM_BUDGET = 24 * 1024 * 1024  # per-block working-set budget (headroom under the cap)
_FULL_FALLBACK_ELEMS = 4096      # tr_full: below this, pure-XLA path
_ENTRIES_BATCH_TILE = 2048       # tr_entries default batch tile (multiple of 1024)


def _round_up(x, m):
    return (x + m - 1) // m * m


# ----------------------------------------------------------------------------
# Pallas kernels
# ----------------------------------------------------------------------------
def _matmul_kernel(a_ref, b_ref, o_ref):
    # One (TM, K) @ (K, TN) block on the MXU; K = r_last*r_mid is the tiny merged
    # rank axis, M/N are the large folded-product axes (lane-dense output block).
    # Result is cast and stored directly in the caller's dtype (no XLA epilogue).
    o_ref[...] = jnp.dot(
        a_ref[...], b_ref[...], preferred_element_type=jnp.float32
    ).astype(o_ref.dtype)


def _pick_tiles(p_left, p_right, rr):
    """Choose (tm, tn) for the tr_full matmul.

    Big lane-dense output tiles (store-bandwidth roofline), multiple-of-(8,128)
    or full-dim block shapes, a VMEM budget guard, and >=2 parallel blocks so
    both TensorCores on v7x are used.
    """
    tn = p_right if p_right <= 2048 else 2048
    tm = p_left if p_left <= 256 else 256

    def vmem(tm_, tn_):  # double-buffered f32 A, B, out blocks
        return 8 * (tm_ * rr + rr * tn_ + tm_ * tn_)

    while vmem(tm, tn) > _VMEM_BUDGET and tn >= 1024:
        tn = (tn // 2) // 128 * 128           # stays a multiple of 128, >= 512
    while vmem(tm, tn) > _VMEM_BUDGET and tm >= 16:
        tm = (tm // 2) // 8 * 8               # stays a multiple of 8, >= 8

    # v7x has 2 TensorCores: make sure the ("parallel","parallel") grid has >= 2 blocks.
    if pl.cdiv(p_left, tm) * pl.cdiv(p_right, tn) < 2:
        if p_right >= 256:
            tn = _round_up(pl.cdiv(p_right, 2), 128)
        elif p_left >= 16:
            tm = _round_up(pl.cdiv(p_left, 2), 8)
    return tm, tn


def _tr_matmul(a, b, out_dtype):
    """out = a @ b with exact out_shape; edge blocks are masked on store."""
    p_left, rr = a.shape
    rr2, p_right = b.shape
    assert rr == rr2
    tm, tn = _pick_tiles(p_left, p_right, rr)
    grid = (pl.cdiv(p_left, tm), pl.cdiv(p_right, tn))
    return pl.pallas_call(
        _matmul_kernel,
        out_shape=jax.ShapeDtypeStruct((p_left, p_right), out_dtype),
        grid=grid,
        in_specs=[
            pl.BlockSpec((tm, rr), lambda i, j: (i, 0)),
            pl.BlockSpec((rr, tn), lambda i, j: (0, j)),
        ],
        out_specs=pl.BlockSpec((tm, tn), lambda i, j: (i, j)),
        compiler_params=pltpu.CompilerParams(
            dimension_semantics=("parallel", "parallel"),
            vmem_limit_bytes=_VMEM_LIMIT,
        ),
    )(a, b)


def _make_tr_idx_kernel(rank_shapes):
    """Kernel over one batch tile: refs = (g_0, ..., g_{K-1}, out).

    g_d block shape: (rank[d-1]*rank[d], SUB, 128); row j*rank[d] + k holds
    cores[d][index[b, d], j, k] for the SUB*128 batch elements b of this tile,
    packed as full (8,128) vregs (batch on lanes AND sublanes).
    The per-sample chain is an unrolled VPU multiply-add over the tiny rank
    axes (core rows loaded on demand -> bounded live vreg set) and the ring
    trace is folded into the last contraction (no eye mask / trace op).
    """

    def kernel(*refs):
        g_refs = refs[:-1]
        o_ref = refs[-1]

        def ld(d, j, k):
            r_out = rank_shapes[d][1]
            return g_refs[d][j * r_out + k].astype(jnp.float32)   # (SUB, 128)

        r_last, r0 = rank_shapes[0]
        # m[a][j]: running product (G_0 ... G_d)[a, j] per batch element.
        m = [[ld(0, a, j) for j in range(r0)] for a in range(r_last)]

        for d in range(1, len(g_refs) - 1):
            r_in, r_out = rank_shapes[d]
            new_m = []
            for a in range(r_last):
                acc = [m[a][0] * ld(d, 0, k) for k in range(r_out)]
                for j in range(1, r_in):
                    mj = m[a][j]
                    for k in range(r_out):
                        acc[k] = acc[k] + mj * ld(d, j, k)
                new_m.append(acc)
            m = new_m

        # Last core + ring closure: out[b] = sum_{a,j} M[a, j, b] * G_last[j, a, b].
        dlast = len(g_refs) - 1
        r_in, _ = rank_shapes[dlast]
        acc = None
        for a in range(r_last):
            for j in range(r_in):
                term = m[a][j] * ld(dlast, j, a)
                acc = term if acc is None else acc + term
        o_ref[...] = acc.astype(o_ref.dtype)   # (SUB, 128) lane-dense store

    return kernel


# ----------------------------------------------------------------------------
# Pure-JAX references (also used as small-problem fallbacks)
# ----------------------------------------------------------------------------
def _ref_full_tr(cores):
    t = cores[0].astype(jnp.float32)
    for c in cores[1:]:
        t = jnp.einsum("...ab,jbc->...jac", t, c.astype(jnp.float32))
    return jnp.trace(t, axis1=-2, axis2=-1)


def _ref_full_tr_idx(cores, index):
    m = jnp.take(cores[0], index[:, 0], axis=0).astype(jnp.float32)
    for d in range(1, len(cores)):
        g = jnp.take(cores[d], index[:, d], axis=0).astype(jnp.float32)
        m = jnp.einsum("bij,bjk->bik", m, g)
    return jnp.trace(m, axis1=1, axis2=2)


# ----------------------------------------------------------------------------
# TR contractions (tiny glue reshapes in JAX, dominant FLOPs/bytes in Pallas)
# ----------------------------------------------------------------------------
def _chain_f32(cores):
    """Left-to-right TR partial product in f32; axes (modes..., r_in_first, r_out_last)."""
    t = cores[0].astype(jnp.float32)
    for c in cores[1:]:
        t = jnp.einsum("...ab,jbc->...jac", t, c.astype(jnp.float32))
    return t


def tr_full(cores):
    """full_tr: reconstruct the dense tensor of shape dims."""
    order = len(cores)
    dims = [int(c.shape[0]) for c in cores]
    out_dtype = cores[0].dtype
    if order == 1:
        # Degenerate single-core ring: per-slice trace, no useful kernel work.
        return jnp.trace(cores[0], axis1=1, axis2=2).astype(out_dtype)

    total = int(np.prod(dims))
    if total < _FULL_FALLBACK_ELEMS:
        # Tiny problem: kernel launch + pipeline setup would dominate.
        return _ref_full_tr(cores).astype(out_dtype)

    r_last = int(cores[0].shape[1])

    # Choose a split so both folded products are as balanced as possible:
    # out[p, q] = sum_{a,b} A[p, (a,b)] * B[(a,b), q]  with  K = r_last*r_mid small.
    best_m, best_gap = 1, None
    for cand in range(1, order):
        gap = abs(int(np.prod(dims[:cand])) - int(np.prod(dims[cand:])))
        if best_gap is None or gap < best_gap:
            best_m, best_gap = cand, gap
    m = best_m
    p_left = int(np.prod(dims[:m]))
    p_right = int(np.prod(dims[m:]))
    r_mid = int(cores[m].shape[1])  # rank[m-1]
    rr = r_last * r_mid

    # Half-chains are tiny compared with the output; build them as XLA glue (f32 accumulation).
    a_t = _chain_f32(cores[:m])                          # (d0..d_{m-1}, r_last, r_mid)
    a_mat = a_t.reshape(p_left, rr)
    b_t = _chain_f32(cores[m:])                          # (d_m..d_{K-1}, r_mid, r_last)
    n_modes = order - m
    perm = (n_modes + 1, n_modes) + tuple(range(n_modes))
    b_mat = jnp.transpose(b_t, perm).reshape(rr, p_right)

    # Single tiled Pallas matmul writes the final-dtype result directly
    # (no pad / slice / cast passes through HBM); reshape to dims is a bitcast.
    out = _tr_matmul(a_mat, b_mat, out_dtype)
    return out.reshape(tuple(dims))


def tr_entries(cores, index, *, batch_tile=_ENTRIES_BATCH_TILE):
    """full_tr_idx: entries at multi-indices; index is (B, order) int -> (B,)."""
    order = len(cores)
    b = int(index.shape[0])
    out_dtype = cores[0].dtype
    index = index.astype(jnp.int32)
    if order == 1:
        g = jnp.take(cores[0], index[:, 0], axis=0)
        return jnp.trace(g, axis1=1, axis2=2).astype(out_dtype)

    assert batch_tile % 1024 == 0, "batch_tile must be a multiple of 1024 (SUB mult. of 8)"
    if b < batch_tile:
        # Small batch: grid/launch overhead dominates; pure-XLA path.
        return _ref_full_tr_idx(cores, index).astype(out_dtype)

    b_pad = _round_up(b, batch_tile)
    if b_pad != b:
        index = jnp.pad(index, ((0, b_pad - b), (0, 0)))  # pad with index 0 (valid)
    nb = b_pad // 128
    sub = batch_tile // 128                               # multiple of 8

    rank_shapes = [(int(c.shape[1]), int(c.shape[2])) for c in cores]

    # Gather per-mode slices (XLA glue), already lane-major in batch:
    # pre-transpose the tiny core once to (r_in*r_out, dim) and gather along its
    # last axis -> (r_in*r_out, B); no big (B, r, r) -> (r*r, B) transpose.
    gathered = []
    for d, c in enumerate(cores):
        r_in, r_out = rank_shapes[d]
        core_t = jnp.transpose(c, (1, 2, 0)).reshape(r_in * r_out, int(c.shape[0]))
        g = jnp.take(core_t, index[:, d], axis=1)                 # (r_in*r_out, b_pad)
        gathered.append(g.reshape(r_in * r_out, nb, 128))          # free reshape

    grid = (b_pad // batch_tile,)
    in_specs = [
        pl.BlockSpec((rank_shapes[d][0] * rank_shapes[d][1], sub, 128),
                     lambda i: (0, i, 0))
        for d in range(order)
    ]
    out = pl.pallas_call(
        _make_tr_idx_kernel(rank_shapes),
        out_shape=jax.ShapeDtypeStruct((nb, 128), out_dtype),
        grid=grid,
        in_specs=in_specs,
        out_specs=pl.BlockSpec((sub, 128), lambda i: (i, 0)),
        compiler_params=pltpu.CompilerParams(
            dimension_semantics=("parallel",),
            vmem_limit_bytes=_VMEM_LIMIT,
        ),
    )(*gathered)
    return out.reshape(b_pad)[:b]


# ----------------------------------------------------------------------------
# Module analogue
# ----------------------------------------------------------------------------
class TensorRingPallas:
    """JAX/Pallas analogue of the PyTorch TensorRing module (forward only)."""

    def __init__(self, dims, init_rank, dtype=jnp.float32, key=None, scale=0.2):
        self.dims = list(dims)
        self.order = len(dims)
        if isinstance(init_rank, int):
            rank = [init_rank] * self.order
        else:
            assert len(init_rank) == len(dims)
            rank = list(init_rank)
        self.rank = rank
        self.dtype = dtype
        if key is None:
            key = jax.random.PRNGKey(0)
        keys = jax.random.split(key, self.order)
        # init_cores_('rand', scale): uniform(0, scale), deterministic via PRNGKey.
        self.cores = [
            jax.random.uniform(keys[d], (self.dims[d], rank[d - 1], rank[d]),
                               dtype=dtype, minval=0.0, maxval=scale)
            for d in range(self.order)
        ]

    def __call__(self, index=None):
        if index is None:
            return tr_full(self.cores)
        return tr_entries(self.cores, index)

    def fit(self, *args, **kwargs):
        raise NotImplementedError  # TODO(synk): training loop is out of scope for the forward kernel


if __name__ == "__main__":
    key = jax.random.PRNGKey(0)

    # --- tr_full: Pallas kernel path (prod(dims) large enough) ---
    dims = (12, 10, 16, 8)
    ranks = [3, 4, 5, 2]            # rank[-1] = 2 closes the ring
    tr = TensorRingPallas(dims, ranks, dtype=jnp.float32, key=key, scale=0.2)

    full = jax.block_until_ready(tr())
    ref_full = _ref_full_tr(tr.cores)
    assert full.shape == dims
    np.testing.assert_allclose(np.asarray(full), np.asarray(ref_full), rtol=1e-5, atol=1e-5)

    # --- tr_full: tiny-problem XLA fallback path ---
    tr_small = TensorRingPallas((8, 6, 4), [3, 4, 2], dtype=jnp.float32,
                                key=jax.random.fold_in(key, 7), scale=0.2)
    full_small = jax.block_until_ready(tr_small())
    np.testing.assert_allclose(np.asarray(full_small),
                               np.asarray(_ref_full_tr(tr_small.cores)),
                               rtol=1e-5, atol=1e-5)

    # --- tr_entries: Pallas kernel path (B >= batch_tile -> 2 parallel tiles) ---
    B = 4096
    idx_cols = []
    for d in range(len(dims)):
        idx_cols.append(
            jax.random.randint(jax.random.fold_in(jax.random.PRNGKey(1), d), (B,), 0, dims[d])
        )
    index = jnp.stack(idx_cols, axis=1).astype(jnp.int32)  # (B, order)
    vals = jax.block_until_ready(tr(index))
    ref_vals = _ref_full_tr_idx(tr.cores, index)
    np.testing.assert_allclose(np.asarray(vals), np.asarray(ref_vals), rtol=1e-5, atol=1e-5)

    # --- tr_entries: tiny-batch fallback path ---
    vals_small = jax.block_until_ready(tr(index[:8]))
    np.testing.assert_allclose(np.asarray(vals_small), np.asarray(ref_vals[:8]),
                               rtol=1e-5, atol=1e-5)

    print("KERNEL_OK")
</pallas_src>

<mosaic_0001>
module attributes {stable_mosaic.version = 11 : i64} {
  func.func @_matmul_kernel(%arg0: i32, %arg1: i32, %arg2: memref<64x8xf32, #tpu.memory_space<vmem>>, %arg3: memref<8x128xf32, #tpu.memory_space<vmem>>, %arg4: memref<64x128xf32, #tpu.memory_space<vmem>>) attributes {dimension_semantics = [#tpu.dimension_semantics<parallel>, #tpu.dimension_semantics<parallel>], iteration_bounds = array<i64: 2, 1>, scalar_prefetch = 0 : i64, scratch_operands = 0 : i64, tpu.core_type = #tpu.core_type<tc>, window_params = [{transform_indices = @transform_0, window_bounds = array<i64: 64, 8>}, {transform_indices = @transform_1, window_bounds = array<i64: 8, 128>}, {transform_indices = @transform_2, window_bounds = array<i64: 64, 128>}]} {
    %c0 = arith.constant 0 : index
    %c0_0 = arith.constant 0 : index
    %0 = vector.load %arg2[%c0, %c0_0] : memref<64x8xf32, #tpu.memory_space<vmem>>, vector<64x8xf32>
    %c0_1 = arith.constant 0 : index
    %c0_2 = arith.constant 0 : index
    %1 = vector.load %arg3[%c0_1, %c0_2] : memref<8x128xf32, #tpu.memory_space<vmem>>, vector<8x128xf32>
    %cst = arith.constant dense<0.000000e+00> : vector<64x128xf32>
    %2 = tpu.matmul %0, %1, %cst {dimension_numbers = #tpu.dot_dimension_numbers<[1], [0], [0], [1], [0, 0, 1, 1], [], []>} : vector<64x8xf32>, vector<8x128xf32>, vector<64x128xf32> -> vector<64x128xf32>
    %c0_3 = arith.constant 0 : index
    %c0_4 = arith.constant 0 : index
    %3 = vector.load %arg4[%c0_3, %c0_4] : memref<64x128xf32, #tpu.memory_space<vmem>>, vector<64x128xf32>
    tpu.vector_store %arg4[%c0_3, %c0_4], %2 {strides = array<i32>} : memref<64x128xf32, #tpu.memory_space<vmem>>, vector<64x128xf32>,
    return
  }
  func.func @transform_0(%arg0: i32, %arg1: i32) -> (i32, i32) {
    %c0_i32 = arith.constant 0 : i32
    %c0_i32_0 = arith.constant 0 : i32
    return %arg0, %c0_i32 : i32, i32
  }
  func.func @transform_1(%arg0: i32, %arg1: i32) -> (i32, i32) {
    %c0_i32 = arith.constant 0 : i32
    %c0_i32_0 = arith.constant 0 : i32
    return %c0_i32, %arg1 : i32, i32
  }
  func.func @transform_2(%arg0: i32, %arg1: i32) -> (i32, i32) {
    %c0_i32 = arith.constant 0 : i32
    return %arg0, %arg1 : i32, i32
  }
}

</mosaic_0001>

<bundles_post_ra>
// kernel: tpu_custom_call.1
= control target key start
LH: loop header
LB: loop body
LE: loop exit
PB: predicated region body
PF: predicated region fallthrough
CT: control target
= control target key end

     0   :  { %7 = vsyncpa [#allocation3], 0  ;;  %s798_s0 = inlined_call_operand.vmem [shape: f32[120,8], index: 0, kind: input, shape index: {}]   ;;  %s799_s1 = inlined_call_operand.vmem [shape: f32[8,128], index: 1, kind: input, shape index: {}]   ;;  %s800_s2 = inlined_call_operand.hbm [shape: f32[120,128], index: 2, kind: output, shape index: {}]  }
   0x1   :  { %9 = vsyncpa [#allocation3 + $0x1], 0  ;;  %s659_s9 = smov 0   ;;  %s661_s10 = smov 0  }
   0x2   :  { %s663_s11 = smov 0   ;;  %s665_s12 = smov 0  }
   0x3   :  { %s667_s13 = smov 0   ;;  %s669_s14 = smov 0  }
   0x4 LB: > { %s455_s15 = sadd.s32 4294967295, %s639_s14   ;;  %s456_s16 = sadd.s32 4294967294, %s639_s14   ;;  %s639_s14 = sphi %s669_s14, %s15_s14   ;;  %s635_s13 = sphi %s667_s13, %s807_s13   ;;  %s631_s12 = sphi %s665_s12, %s806_s12   ;;  %s627_s11 = sphi %s663_s11, %s805_s11   ;;  %s623_s10 = sphi %s661_s10, %s804_s10   ;;  %s619_s9 = sphi %s659_s9, %s803_s9  }
   0x5   : > { %s27_s17 = sadd.s32 1, %s635_s13  ;;  %s88_s18 = sadd.s32 1, %s627_s11 }
   0x6   : > { %p29_p0 = scmp.ge.s32.totalorder %s27_s17, 2  ;;  %p98_p1 = scmp.ne.s32.totalorder %s627_s11, %s623_s10 }
   0x7   : > { %p99_p2 = scmp.eq.s32.totalorder %s455_s15, 1  ;;  %p104_p3 = scmp.ne.s32.totalorder %s623_s10, %s619_s9 }
   0x8   : > { %s809_s17 = smov (%p29_p0, %s27_s17), 0  ;;  %p105_p5 = scmp.eq.s32.totalorder %s456_s16, 1 }
   0x9   : > { %p699_p4 = por %p99_p2, %p98_p1  ;;  %s83_s20 = ssub.s32 %s635_s13, %s809_s17 }
   0xa   : > { %p460_p6 = scmp.ge.s32.totalorder %s639_s14, 1  ;;  %p86_p7 = scmp.eq.s32.totalorder %s83_s20, 0 }
   0xb   : > { %p706_p8 = por %p105_p5, %p104_p3  ;;  %p147_p9 = scmp.lt.s32.totalorder %s639_s14, 3 }
   0xc   : > { %s712_s22 = scalar_select %p86_p7, %s627_s11, %s88_s18  }
   0xd   : > { %p148_p10 = pnand %p460_p6, %p147_p9 }
   0xe   : > { %s718_s25 = sshll.u32 (!%p148_p10), %s631_s12, 3  ;;  %s174_s3 = sand.u32 (!%p148_p10), 1, %s623_s10  }
   0xf   : > { %151 = sbr.rel (%p148_p10) target bundleno = 254 (0xfe), region = 28  ;;  %p182_p11 = scmp.lt.s32.totalorder (!%p148_p10), %s718_s25, 14 }
  0x10   : > { %s461_s4 = sshll.u32 (!%p148_p10), %s174_s3, 6  ;;  %s734_s6 = scalar_lea.sflag (!%p148_p10), [#allocation3], %s174_s3 }
  0x11   : > { %s176_s5 = scalar_lea.vmem (!%p148_p10), [#allocation2], %s461_s4 }
  0x14   : > { %v208_v0 = vld [vmem:[%s799_s1] sm:$0xff]  ;;  %s183_s26 = scalar_select %p182_p11, %s718_s25, 14  ;;  %vm209_vm0 = vcmask 64512  }
  0x15   : > { %491 = vmatprep.subr.mxu0 %v208_v0  ;;  %505 = vmatprep.subr.mxu1 %v208_v0  ;;  %s356_s7 = ssub.s32 (%p699_p4), 15, %s718_s25 }
  0x16   : > { %492 = vmatpush3.msra.mxu0 %v208_v0  ;;  %506 = vmatpush3.msra.mxu1 %v208_v0  ;;  %s463_s27 = sshll.u32 %s183_s26, 3  ;;  %p357_p12 = scmp.lt.s32.totalorder (%p699_p4), %s356_s7, 8 }
  0x17   : > { %s185_s30 = scalar_lea.vmem %s798_s0, %s463_s27 }
  0x18   : > { %v200_v1 = vld [vmem:[%s185_s30] sm:$0xff]  ;;  %v201_v3 = vld [vmem:[%s185_s30 + $0x8] sm:$0xff]  ;;  %v202_v5 = vld [vmem:[%s185_s30 + $0x10] sm:$0xff] }
  0x19   : > { %v204_v2 = vld [vmem:[%s185_s30 + $0x20] sm:$0xff]  ;;  %493 = vmatprep.mubr.msk.f32.mxu0 %vm209_vm0, %v200_v1  ;;  %v205_v4 = vld [vmem:[%s185_s30 + $0x28] sm:$0xff]  ;;  %v206_v6 = vld [vmem:[%s185_s30 + $0x30] sm:$0xff] }
  0x1a   : > { %499 = vmatprep.mubr.msk.f32.mxu1 %vm209_vm0, %v204_v2  ;;  %494 = vmatmul.mubr.msk.f32.vlgmr.msra.gmra.mxu0 %vm209_vm0, %v201_v3  ;;  %v203_v7 = vld [vmem:[%s185_s30 + $0x18] sm:$0xff] }
  0x1b   : > { %500 = vmatmul.mubr.msk.f32.vlgmr.msra.gmra.mxu1 %vm209_vm0, %v205_v4  ;;  %496 = vmatprep.mubr.msk.f32.mxu0 %vm209_vm0, %v202_v5  ;;  %v207_v8 = vld [vmem:[%s185_s30 + $0x38] sm:$0xff] }
  0x1c   : > { %502 = vmatprep.mubr.msk.f32.mxu1 %vm209_vm0, %v206_v6 }
  0x1e   : > { %497 = vmatmul.mubr.msk.f32.gmra.mxu0 %vm209_vm0, %v203_v7 }
  0x1f   : > { %503 = vmatmul.mubr.msk.f32.gmra.mxu1 %vm209_vm0, %v207_v8 }
  0xda   : > { %v495_v9 = vpop.f32.mrf.mxu0 }
  0xdb   : > { %v501_v10 = vpop.f32.mrf.mxu1  ;;  %340 = vst [vmem:[%s176_s5 + $0x8] sm:$0xff] %v495_v9 }
  0xdc   : > { %344 = vst [vmem:[%s176_s5 + $0x28] sm:$0xff] %v501_v10  ;;  %v300_v11 = vpop.f32.mrf.mxu0 }
  0xdd   : > { %v320_v12 = vpop.f32.mrf.mxu1  ;;  %339 = vst [vmem:[%s176_s5] sm:$0xff] %v300_v11 }
  0xde   : > { %343 = vst [vmem:[%s176_s5 + $0x20] sm:$0xff] %v320_v12  ;;  %v498_v13 = vpop.f32.mrf.mxu0  ;;  %354 = sbr.rel (!%p699_p4) target bundleno = 254 (0xfe), region = 32 }
  0xdf   : > { %v504_v14 = vpop.f32.mrf.mxu1  ;;  %342 = vst [vmem:[%s176_s5 + $0x18] sm:$0xff] %v498_v13 }
  0xe0   : > { %346 = vst [vmem:[%s176_s5 + $0x38] sm:$0xff] %v504_v14  ;;  %v310_v15 = vpop.f32.mrf.mxu0 }
  0xe1   : > { %v330_v16 = vpop.f32.mrf.mxu1  ;;  %341 = vst [vmem:[%s176_s5 + $0x10] sm:$0xff] %v310_v15 }
  0xe2   : > { %345 = vst [vmem:[%s176_s5 + $0x30] sm:$0xff] %v330_v16 }
  0xe3   : > { %s811_s7 = smov (!%p357_p12, %s356_s7), 8 }
  0xe4   : > { %s739_s8 = sshll.u32 %s811_s7, 7 }
  0xe5   : > { %s361_s15 = ssub.s32 1024, %s739_s8 }
  0xe6   : > { %362 = vsyncadd %s734_s6, %s361_s15  ;;  %p475_p13 = scmp.ne.s32.totalorder %s739_s8, 0  ;;  %s481_s16 = sshll.u32 %s631_s12, 10 }
  0xe7   : > { %s748_s19 = scalar_lea.hbm %s800_s2, %s481_s16  ;;  %s368_s23 = sshll.u32 %s176_s5, 4  ;;  %s750_s23 = int_to_ptr.vmem [resolvable:$true] %s368_s23 }
  0xe8   : > { %s563_s24 = scalar_lea.vmem %s750_s23, %s739_s8  ;;  %s641_s25 = smov [#allocation2]  }
  0xe9   : > { %p564_p0 = scmp.ne.s32.totalorder %s750_s23, %s563_s24  ;;  %s567_s26 = sshll.u32 %s641_s25, 4  ;;  %s568_s26 = int_to_ptr.vmem [resolvable:$false] %s567_s26 }
  0xea   : > { %s569_s12 = scalar_lea.vmem %s568_s26, 2048  ;;  %p570_p3 = scmp.lt.s32.totalorder %s750_s23, %s568_s26 }
  0xeb   : > { %p565_p1 = pnand %p564_p0, %p475_p13  ;;  %p571_p4 = scmp.lt.s32.totalorder %s569_s12, %s563_s24 }
  0xed   : > { %p566_p2 = pneg %p565_p1  ;;  %p572_p5 = por %p571_p4, %p570_p3 }
  0xef   : > { %p573_p6 = pnand %p572_p5, %p566_p2 }
  0xf1   : > { %576 = shalt.err (!%p573_p6)
}
  0xf2   : > { %s577_s27 = scalar_lea.hbm %s748_s19, %s739_s8  ;;  %s581_s30 = scalar_lea.hbm %s800_s2, 1920 }
  0xf3   : > { %p578_p7 = scmp.ne.s32.totalorder %s748_s19, %s577_s27  ;;  %p582_p11 = scmp.lt.s32.totalorder %s748_s19, %s800_s2 }
  0xf4   : > { %p583_p12 = scmp.lt.s32.totalorder %s581_s30, %s577_s27 }
  0xf5   : > { %p579_p9 = pnand %p578_p7, %p475_p13 }
  0xf6   : > { %p584_p0 = por %p583_p12, %p582_p11 }
  0xf7   : > { %p580_p10 = pneg %p579_p9 }
  0xf9   : > { %p585_p1 = pnand %p584_p0, %p580_p10 }
  0xfb   : > { %588 = shalt.err (!%p585_p1)
}
  0xfc   : > { %s642_s5 = smov 128   ;;  %s643_s7 = smov 8  }
  0xfd   : > { %374 = dma.vmem_to_hbm [thread:$0]  (%p475_p13), %s750_s23, %s739_s8, %s748_s19, %s734_s6, %s642_s5, %s642_s5, %s643_s7  }
  0xfe PF: > { %p512_p2 = scmp.ge.s32.totalorder %s639_s14, 2  ;;  %s383_s15 = sand.u32 1, %s619_s9  }
  0xff   : > { %s384_s16 = scalar_lea.sflag [#allocation3], %s383_s15 }
 0x100   : > { %p509_p3 = pnand %p512_p2, %p706_p8 }
 0x102   : > { %p510_p4 = pneg %p509_p3 }
 0x104   : > { %614 = dma.done.wait (%p510_p4), %s384_s16, 1024  }
 0x105   : > { %616 = vsyncadd (%p510_p4), %s384_s16, 4294966272  ;;  %s15_s14 = sadd.s32 1, %s639_s14   ;;  %s803_s9 = smov %s623_s10 }
 0x106   : > { %p12_p5 = scmp.ge.s32.totalorder %s15_s14, 4   ;;  %s804_s10 = smov %s627_s11 }
 0x107   : > { %s805_s11 = smov %s712_s22  ;;  %s806_s12 = smov %s635_s13 }
 0x108   : > { %s807_s13 = smov %s809_s17  ;;  %14 = sbr.rel (!%p12_p5) target bundleno = 4 (0x4), region = 66 }
 0x10d   :  { %389 = vsyncpa [#allocation3], 1 }
 0x10e   :  { %391 = vsyncpa [#allocation3 + $0x1], 1 }

</bundles_post_ra>
